<compile_context>
chip_gen: v6e
topology: v6e:2x2x1
jax: 0.10.0
libtpu: 0.0.40
codegen_flags: <defaults>
</compile_context>

<pallas_src>
import functools

import jax
import jax.numpy as jnp
from jax.experimental import pallas as pl
from jax.experimental.pallas import tpu as pltpu

_LANES = 128
_SUBLANES = 8


def _round_up(n, m):
    return ((n + m - 1) // m) * m


def _mlp_kernel(x_ref, w1_ref, b1_ref, w2_ref, b2_ref, w3_ref, b3_ref, o_ref):
    # Entire 3-layer MLP for one batch tile, all on-chip (MXU matmuls + VPU relu/bias).
    # Activations are cast to the weight dtype before each dot so the optional
    # bf16 path keeps the MXU in bf16; accumulation is always f32.
    wdt = w1_ref.dtype
    x = x_ref[...].astype(wdt)
    h1 = jnp.dot(x, w1_ref[...], preferred_element_type=jnp.float32) + b1_ref[...]
    h1 = jnp.maximum(h1, 0.0).astype(wdt)
    h2 = jnp.dot(h1, w2_ref[...], preferred_element_type=jnp.float32) + b2_ref[...]
    h2 = jnp.maximum(h2, 0.0).astype(wdt)
    out = jnp.dot(h2, w3_ref[...], preferred_element_type=jnp.float32) + b3_ref[...]
    o_ref[...] = out.astype(o_ref.dtype)


def _target_grid_steps():
    # v7x: 2 TensorCores -> ~4 steps/core => 8 grid steps. v5e/v6e: single TC -> 4.
    try:
        kind = jax.devices()[0].device_kind.lower()
    except Exception:  # pragma: no cover - defensive; fall back to single-TC policy
        kind = ""
    return 8 if ("v7" in kind or "7x" in kind) else 4


@functools.partial(jax.jit, static_argnames=("out_dim", "tb_max", "use_bf16"))
def simple_ann_forward(x, kparams, *, out_dim=1, tb_max=2048, use_bf16=False):
    """x: (B, input_dim) float32. kparams: prepare_params() output (w3/b3 lane-padded)."""
    B, D = x.shape
    w1, b1 = kparams["w1"], kparams["b1"]
    w2, b2 = kparams["w2"], kparams["b2"]
    w3, b3 = kparams["w3"], kparams["b3"]  # already padded to a lane-dense width
    H1, H2 = w1.shape[1], w2.shape[1]
    O_pad = w3.shape[1]

    if use_bf16:
        x = x.astype(jnp.bfloat16)
        w1 = w1.astype(jnp.bfloat16)
        w2 = w2.astype(jnp.bfloat16)
        w3 = w3.astype(jnp.bfloat16)

    # --- Batch tiling: aim for ~target_steps grid steps, cap the tile size. ---
    target_steps = _target_grid_steps()
    tb_eff = _round_up(pl.cdiv(B, target_steps), _SUBLANES)
    tb_eff = min(tb_eff, tb_max)                      # huge batches: more, bigger steps
    tb_eff = min(tb_eff, _round_up(B, _SUBLANES))     # small batches: one small tile
    tb_eff = max(tb_eff, _SUBLANES)
    grid_b = pl.cdiv(B, tb_eff)                       # ragged last block handled by Pallas

    # Per-tile double-buffered VMEM footprint (x + out + resident weights) is
    # well under the 32 MiB scoped default on every chip generation (incl. v7x's
    # 64 MiB physical), so no vmem_limit_bytes override is needed at these sizes.

    # --- Scheduling hint for XLA around the custom call. ---
    x_sz = jnp.dtype(x.dtype).itemsize
    w_sz = jnp.dtype(w1.dtype).itemsize
    flops = 2 * B * (D * H1 + H1 * H2 + H2 * O_pad)
    bytes_accessed = (
        x_sz * B * D
        + w_sz * (D * H1 + H1 * H2 + H2 * O_pad)
        + 4 * (H1 + H2 + O_pad)          # biases (f32)
        + 4 * B * O_pad                  # output (f32)
    )

    out = pl.pallas_call(
        _mlp_kernel,
        out_shape=jax.ShapeDtypeStruct((B, O_pad), jnp.float32),
        grid_spec=pltpu.PrefetchScalarGridSpec(
            num_scalar_prefetch=0,
            grid=(grid_b,),
            in_specs=[
                pl.BlockSpec((tb_eff, D), lambda i: (i, 0)),   # x tile
                pl.BlockSpec((D, H1), lambda i: (0, 0)),       # w1 (resident)
                pl.BlockSpec((1, H1), lambda i: (0, 0)),       # b1
                pl.BlockSpec((H1, H2), lambda i: (0, 0)),      # w2
                pl.BlockSpec((1, H2), lambda i: (0, 0)),       # b2
                pl.BlockSpec((H2, O_pad), lambda i: (0, 0)),   # w3 (lane-dense padded)
                pl.BlockSpec((1, O_pad), lambda i: (0, 0)),    # b3 (padded)
            ],
            out_specs=pl.BlockSpec((tb_eff, O_pad), lambda i: (i, 0)),
        ),
        compiler_params=pltpu.CompilerParams(
            dimension_semantics=("parallel",),
        ),
        cost_estimate=pl.CostEstimate(
            flops=flops, transcendentals=0, bytes_accessed=bytes_accessed
        ),
    )(x, w1, b1, w2, b2, w3, b3)

    # Fused (under jit) slice back to the logical (B, out_dim) result.
    return out[:, :out_dim]


def init_params(key, input_dim, h1=64, h2=64, out=1):
    # Deterministic synthetic init (PyTorch-like uniform fan-in bound), stored as (in, out).
    ks = jax.random.split(key, 6)

    def lin(kw, kb, fan_in, fan_out):
        bound = 1.0 / jnp.sqrt(fan_in)
        w = jax.random.uniform(kw, (fan_in, fan_out), jnp.float32, -bound, bound)
        b = jax.random.uniform(kb, (1, fan_out), jnp.float32, -bound, bound)
        return w, b

    w1, b1 = lin(ks[0], ks[1], input_dim, h1)
    w2, b2 = lin(ks[2], ks[3], h1, h2)
    w3, b3 = lin(ks[4], ks[5], h2, out)
    return {"w1": w1, "b1": b1, "w2": w2, "b2": b2, "w3": w3, "b3": b3}


def prepare_params(params, *, lanes=_LANES):
    """One-time (hoisted) lane padding of the final layer to an unmasked-vst width."""
    w3, b3 = params["w3"], params["b3"]
    h2, out = w3.shape
    o_pad = max(lanes, _round_up(out, lanes))
    kp = dict(params)
    if o_pad != out:
        kp["w3"] = jnp.zeros((h2, o_pad), w3.dtype).at[:, :out].set(w3)
        kp["b3"] = jnp.zeros((1, o_pad), b3.dtype).at[:, :out].set(b3)
    return kp, out


def _ref_forward(x, p):
    h1 = jnp.maximum(x @ p["w1"] + p["b1"], 0.0)
    h2 = jnp.maximum(h1 @ p["w2"] + p["b2"], 0.0)
    return h2 @ p["w3"] + p["b3"]


if __name__ == "__main__":
    key = jax.random.PRNGKey(0)
    k_x, k_p = jax.random.split(key)

    B, INPUT_DIM = 8, 32
    x = jax.random.normal(k_x, (B, INPUT_DIM), dtype=jnp.float32)
    params = init_params(k_p, INPUT_DIM)
    kparams, out_dim = prepare_params(params)

    out = jax.block_until_ready(simple_ann_forward(x, kparams, out_dim=out_dim))
    ref = _ref_forward(x, params)
    assert out.shape == (B, 1)
    assert jnp.allclose(out, ref, atol=1e-5, rtol=1e-5), "mismatch vs pure-JAX reference"

    # Ragged, larger batch: exercises the multi-step grid + partial last block
    # (no wrapper-side padding of x).
    B2 = 600
    x2 = jax.random.normal(k_x, (B2, INPUT_DIM), dtype=jnp.float32)
    out2 = jax.block_until_ready(simple_ann_forward(x2, kparams, out_dim=out_dim))
    ref2 = _ref_forward(x2, params)
    assert out2.shape == (B2, 1)
    assert jnp.allclose(out2, ref2, atol=1e-5, rtol=1e-5), "mismatch on ragged batch"

    # Optional bf16 MXU path (v6e/v7x win); relaxed tolerance by design.
    out_bf16 = jax.block_until_ready(
        simple_ann_forward(x2, kparams, out_dim=out_dim, use_bf16=True)
    )
    assert out_bf16.shape == (B2, 1)
    assert jnp.allclose(out_bf16, ref2, atol=1e-1, rtol=1e-1), "bf16 path far off f32 ref"

    print("KERNEL_OK")
</pallas_src>

<mosaic_0001>
module attributes {stable_mosaic.version = 11 : i64} {
  func.func @_mlp_kernel(%arg0: i32, %arg1: memref<8x32xf32, #tpu.memory_space<vmem>>, %arg2: memref<32x64xf32, #tpu.memory_space<vmem>>, %arg3: memref<1x64xf32, #tpu.memory_space<vmem>>, %arg4: memref<64x64xf32, #tpu.memory_space<vmem>>, %arg5: memref<1x64xf32, #tpu.memory_space<vmem>>, %arg6: memref<64x128xf32, #tpu.memory_space<vmem>>, %arg7: memref<1x128xf32, #tpu.memory_space<vmem>>, %arg8: memref<8x128xf32, #tpu.memory_space<vmem>>) attributes {dimension_semantics = [#tpu.dimension_semantics<parallel>], iteration_bounds = array<i64: 1>, scalar_prefetch = 0 : i64, scratch_operands = 0 : i64, tpu.core_type = #tpu.core_type<tc>, window_params = [{transform_indices = @transform_0, window_bounds = array<i64: 8, 32>}, {pipeline_mode = #tpu.pipeline_mode<synchronous>, transform_indices = @transform_1, window_bounds = array<i64: 32, 64>}, {pipeline_mode = #tpu.pipeline_mode<synchronous>, transform_indices = @transform_2, window_bounds = array<i64: 1, 64>}, {pipeline_mode = #tpu.pipeline_mode<synchronous>, transform_indices = @transform_3, window_bounds = array<i64: 64, 64>}, {pipeline_mode = #tpu.pipeline_mode<synchronous>, transform_indices = @transform_4, window_bounds = array<i64: 1, 64>}, {pipeline_mode = #tpu.pipeline_mode<synchronous>, transform_indices = @transform_5, window_bounds = array<i64: 64, 128>}, {pipeline_mode = #tpu.pipeline_mode<synchronous>, transform_indices = @transform_6, window_bounds = array<i64: 1, 128>}, {transform_indices = @transform_7, window_bounds = array<i64: 8, 128>}]} {
    %c0 = arith.constant 0 : index
    %c0_0 = arith.constant 0 : index
    %0 = vector.load %arg1[%c0, %c0_0] : memref<8x32xf32, #tpu.memory_space<vmem>>, vector<8x32xf32>
    %c0_1 = arith.constant 0 : index
    %c0_2 = arith.constant 0 : index
    %1 = vector.load %arg2[%c0_1, %c0_2] : memref<32x64xf32, #tpu.memory_space<vmem>>, vector<32x64xf32>
    %cst = arith.constant dense<0.000000e+00> : vector<8x64xf32>
    %2 = tpu.matmul %0, %1, %cst {dimension_numbers = #tpu.dot_dimension_numbers<[1], [0], [0], [1], [0, 0, 1, 1], [], []>} : vector<8x32xf32>, vector<32x64xf32>, vector<8x64xf32> -> vector<8x64xf32>
    %c0_3 = arith.constant 0 : index
    %c0_4 = arith.constant 0 : index
    %3 = vector.load %arg3[%c0_3, %c0_4] : memref<1x64xf32, #tpu.memory_space<vmem>>, vector<1x64xf32>
    %4 = vector.broadcast %3 : vector<1x64xf32> to vector<8x64xf32>
    %5 = arith.addf %2, %4 : vector<8x64xf32>
    %cst_5 = arith.constant 0.000000e+00 : f32
    %6 = vector.broadcast %cst_5 : f32 to vector<8x64xf32>
    %7 = arith.maximumf %5, %6 : vector<8x64xf32>
    %c0_6 = arith.constant 0 : index
    %c0_7 = arith.constant 0 : index
    %8 = vector.load %arg4[%c0_6, %c0_7] : memref<64x64xf32, #tpu.memory_space<vmem>>, vector<64x64xf32>
    %cst_8 = arith.constant dense<0.000000e+00> : vector<8x64xf32>
    %9 = tpu.matmul %7, %8, %cst_8 {dimension_numbers = #tpu.dot_dimension_numbers<[1], [0], [0], [1], [0, 0, 1, 1], [], []>} : vector<8x64xf32>, vector<64x64xf32>, vector<8x64xf32> -> vector<8x64xf32>
    %c0_9 = arith.constant 0 : index
    %c0_10 = arith.constant 0 : index
    %10 = vector.load %arg5[%c0_9, %c0_10] : memref<1x64xf32, #tpu.memory_space<vmem>>, vector<1x64xf32>
    %11 = vector.broadcast %10 : vector<1x64xf32> to vector<8x64xf32>
    %12 = arith.addf %9, %11 : vector<8x64xf32>
    %cst_11 = arith.constant 0.000000e+00 : f32
    %13 = vector.broadcast %cst_11 : f32 to vector<8x64xf32>
    %14 = arith.maximumf %12, %13 : vector<8x64xf32>
    %c0_12 = arith.constant 0 : index
    %c0_13 = arith.constant 0 : index
    %15 = vector.load %arg6[%c0_12, %c0_13] : memref<64x128xf32, #tpu.memory_space<vmem>>, vector<64x128xf32>
    %cst_14 = arith.constant dense<0.000000e+00> : vector<8x128xf32>
    %16 = tpu.matmul %14, %15, %cst_14 {dimension_numbers = #tpu.dot_dimension_numbers<[1], [0], [0], [1], [0, 0, 1, 1], [], []>} : vector<8x64xf32>, vector<64x128xf32>, vector<8x128xf32> -> vector<8x128xf32>
    %c0_15 = arith.constant 0 : index
    %c0_16 = arith.constant 0 : index
    %17 = vector.load %arg7[%c0_15, %c0_16] : memref<1x128xf32, #tpu.memory_space<vmem>>, vector<1x128xf32>
    %18 = vector.broadcast %17 : vector<1x128xf32> to vector<8x128xf32>
    %19 = arith.addf %16, %18 : vector<8x128xf32>
    %c0_17 = arith.constant 0 : index
    %c0_18 = arith.constant 0 : index
    %20 = vector.load %arg8[%c0_17, %c0_18] : memref<8x128xf32, #tpu.memory_space<vmem>>, vector<8x128xf32>
    tpu.vector_store %arg8[%c0_17, %c0_18], %19 {strides = array<i32>} : memref<8x128xf32, #tpu.memory_space<vmem>>, vector<8x128xf32>,
    return
  }
  func.func @transform_0(%arg0: i32) -> (i32, i32) {
    %c0_i32 = arith.constant 0 : i32
    %c0_i32_0 = arith.constant 0 : i32
    return %arg0, %c0_i32 : i32, i32
  }
  func.func @transform_1(%arg0: i32) -> (i32, i32) {
    %c0_i32 = arith.constant 0 : i32
    %c0_i32_0 = arith.constant 0 : i32
    %c0_i32_1 = arith.constant 0 : i32
    return %c0_i32, %c0_i32_0 : i32, i32
  }
  func.func @transform_2(%arg0: i32) -> (i32, i32) {
    %c0_i32 = arith.constant 0 : i32
    %c0_i32_0 = arith.constant 0 : i32
    %c0_i32_1 = arith.constant 0 : i32
    return %c0_i32, %c0_i32_0 : i32, i32
  }
  func.func @transform_3(%arg0: i32) -> (i32, i32) {
    %c0_i32 = arith.constant 0 : i32
    %c0_i32_0 = arith.constant 0 : i32
    %c0_i32_1 = arith.constant 0 : i32
    return %c0_i32, %c0_i32_0 : i32, i32
  }
  func.func @transform_4(%arg0: i32) -> (i32, i32) {
    %c0_i32 = arith.constant 0 : i32
    %c0_i32_0 = arith.constant 0 : i32
    %c0_i32_1 = arith.constant 0 : i32
    return %c0_i32, %c0_i32_0 : i32, i32
  }
  func.func @transform_5(%arg0: i32) -> (i32, i32) {
    %c0_i32 = arith.constant 0 : i32
    %c0_i32_0 = arith.constant 0 : i32
    %c0_i32_1 = arith.constant 0 : i32
    return %c0_i32, %c0_i32_0 : i32, i32
  }
  func.func @transform_6(%arg0: i32) -> (i32, i32) {
    %c0_i32 = arith.constant 0 : i32
    %c0_i32_0 = arith.constant 0 : i32
    %c0_i32_1 = arith.constant 0 : i32
    return %c0_i32, %c0_i32_0 : i32, i32
  }
  func.func @transform_7(%arg0: i32) -> (i32, i32) {
    %c0_i32 = arith.constant 0 : i32
    %c0_i32_0 = arith.constant 0 : i32
    return %arg0, %c0_i32 : i32, i32
  }
}

</mosaic_0001>

<bundles_post_ra>
// kernel: simple_ann_forward.1
= control target key start
LH: loop header
LB: loop body
LE: loop exit
PB: predicated region body
PF: predicated region fallthrough
CT: control target
= control target key end

     0   :  { %12 = vsyncpa [#allocation3], 0  ;;  %s633_s0 = inlined_call_operand.hbm [shape: f32[8,32], index: 0, kind: input, shape index: {}]   ;;  %s634_s1 = inlined_call_operand.hbm [shape: f32[32,64], index: 1, kind: input, shape index: {}]   ;;  %s635_s2 = inlined_call_operand.vmem [shape: f32[1,64], index: 2, kind: input, shape index: {}]   ;;  %s636_s3 = inlined_call_operand.hbm [shape: f32[64,64], index: 3, kind: input, shape index: {}]   ;;  %s637_s4 = inlined_call_operand.vmem [shape: f32[1,64], index: 4, kind: input, shape index: {}]   ;;  %s638_s5 = inlined_call_operand.hbm [shape: f32[64,128], index: 5, kind: input, shape index: {}]   ;;  %s639_s6 = inlined_call_operand.vmem [shape: f32[1,128], index: 6, kind: input, shape index: {}]   ;;  %s640_s7 = inlined_call_operand.vmem [shape: f32[8,128], index: 7, kind: output, shape index: {}]  }
   0x1   :  { %13 = vsyncpa [#allocation5], 0 }
   0x2   :  { %14 = vsyncpa [#allocation8], 0  ;;  %s524_s24 = smov [#allocation4]  }
   0x3   :  { %s30_s25 = sshll.u32 %s524_s24, 4  ;;  %s31_s25 = int_to_ptr.vmem [resolvable:$true] %s30_s25 }
   0x4   :  { %s446_s26 = scalar_lea.vmem %s31_s25, 512  ;;  %p451_p1 = scmp.lt.s32.totalorder %s31_s25, %s31_s25 }
   0x5   :  { %p447_p0 = scmp.ne.s32.totalorder %s31_s25, %s446_s26  ;;  %p452_p2 = scmp.lt.s32.totalorder %s446_s26, %s446_s26 }
   0x7   :  { %p453_p3 = por %p452_p2, %p451_p1 }
   0x9   :  { %p454_p4 = pnand %p453_p3, %p447_p0 }
   0xb   :  { %457 = shalt.err (!%p454_p4)
}
   0xc   :  { %s525_s27 = smov 128   ;;  %s526_s28 = smov 8  }
   0xd   :  { %36 = dma.hbm_to_vmem [thread:$0]  %s634_s1, 512, %s31_s25, [#allocation5], %s525_s27, %s525_s27, %s526_s28  }
   0xe   :  { %s527_s8 = smov [#allocation2]   ;;  %s528_s10 = smov [#allocation6]  }
   0xf   :  { %s21_s9 = sshll.u32 %s527_s8, 4  ;;  %s44_s11 = sshll.u32 %s528_s10, 4  ;;  %s22_s9 = int_to_ptr.vmem [resolvable:$true] %s21_s9  ;;  %s45_s11 = int_to_ptr.vmem [resolvable:$true] %s44_s11 }
  0x10   :  { %s466_s12 = scalar_lea.vmem %s22_s9, 128  ;;  %p471_p6 = scmp.lt.s32.totalorder %s22_s9, %s22_s9 }
  0x11   :  { %p467_p5 = scmp.ne.s32.totalorder %s22_s9, %s466_s12  ;;  %p472_p7 = scmp.lt.s32.totalorder %s466_s12, %s466_s12 }
  0x13   :  { %p473_p8 = por %p472_p7, %p471_p6 }
  0x15   :  { %p474_p9 = pnand %p473_p8, %p467_p5 }
  0x17   :  { %477 = shalt.err (!%p474_p9)
}
  0x18   :  { %24 = dma.hbm_to_vmem [thread:$0]  %s633_s0, 128, %s22_s9, [#allocation3]  }
  0x19   :  { %s486_s15 = scalar_lea.vmem %s45_s11, 1024  ;;  %p491_p11 = scmp.lt.s32.totalorder %s45_s11, %s45_s11 }
  0x1a   :  { %p487_p10 = scmp.ne.s32.totalorder %s45_s11, %s486_s15  ;;  %p492_p12 = scmp.lt.s32.totalorder %s486_s15, %s486_s15 }
  0x1c   :  { %p493_p13 = por %p492_p12, %p491_p11 }
  0x1e   :  { %p494_p0 = pnand %p493_p13, %p487_p10 }
  0x20   :  { %497 = shalt.err (!%p494_p0)
}
  0x21   :  { %50 = dma.hbm_to_vmem [thread:$0]  %s636_s3, 1024, %s45_s11, [#allocation5], %s525_s27, %s525_s27, %s526_s28  }
  0x22   :  { %s529_s17 = smov [#allocation7]  }
  0x23   :  { %s58_s18 = sshll.u32 %s529_s17, 4  ;;  %s59_s18 = int_to_ptr.vmem [resolvable:$true] %s58_s18 }
  0x24   :  { %s506_s19 = scalar_lea.vmem %s59_s18, 1024  ;;  %p511_p2 = scmp.lt.s32.totalorder %s59_s18, %s59_s18 }
  0x25   :  { %p507_p1 = scmp.ne.s32.totalorder %s59_s18, %s506_s19  ;;  %p512_p3 = scmp.lt.s32.totalorder %s506_s19, %s506_s19 }
  0x27   :  { %p513_p4 = por %p512_p3, %p511_p2 }
  0x29   :  { %p514_p5 = pnand %p513_p4, %p507_p1 }
  0x2b   :  { %517 = shalt.err (!%p514_p5)
}
  0x2c   :  { %64 = dma.hbm_to_vmem [thread:$0]  %s638_s5, 1024, %s59_s18, [#allocation8], %s525_s27, %s525_s27, %s526_s28  }
  0x2d   :  { %518 = dma.done.wait [#allocation3], 128  }
  0x2e   :  { %519 = vsyncadd [#allocation3], 4294967168 }
  0x2f   :  { %520 = dma.done.wait [#allocation5], 1536  }
  0x30   :  { %521 = vsyncadd [#allocation5], 4294965760 }
  0x31   :  { %522 = dma.done.wait [#allocation8], 1024  }
  0x32   :  { %523 = vsyncadd [#allocation8], 4294966272  ;;  %v530_v0 = vmov 0.0   ;;  %vm531_vm0 = vmmov 0   ;;  %v83_v1 = vld [vmem:[#allocation4 + $0x18] sm:$0xff]  ;;  %v82_v2 = vld [vmem:[#allocation4 + $0x10] sm:$0xff] }
  0x33   :  { %381 = vmatprep.subr.mxu0 %v530_v0  ;;  %389 = vmatprep.mubr.msk.f32.mxu0 %vm531_vm0, %v530_v0  ;;  %v173_v3 = vld [vmem:[#allocation6 + $0x38] sm:$0xff]  ;;  %v81_v4 = vld [vmem:[#allocation4 + $0x8] sm:$0xff]  ;;  %v172_v5 = vld [vmem:[#allocation6 + $0x30] sm:$0xff]  ;;  %vm91_vm1 = vcmask 261120   ;;  %vm181_vm2 = vcmask 523264  }
  0x34   :  { %392 = vmatprep.subr.mxu1 %v530_v0  ;;  %408 = vmatprep.mubr.msk.f32.mxu1 %vm531_vm0, %v530_v0  ;;  %v171_v6 = vld [vmem:[#allocation6 + $0x28] sm:$0xff]  ;;  %v80_v7 = vld [vmem:[#allocation4] sm:$0xff]  ;;  %v79_v8 = vld [vmem:[#allocation2] sm:$0xff] }
  0x35   :  { %382 = vmatpush3.msra.mxu0 %v83_v1  ;;  %393 = vmatpush3.msra.mxu1 %v173_v3  ;;  %v170_v9 = vld [vmem:[#allocation6 + $0x20] sm:$0xff]  ;;  %v169_v10 = vld [vmem:[#allocation6 + $0x18] sm:$0xff]  ;;  %v168_v11 = vld [vmem:[#allocation6 + $0x10] sm:$0xff] }
  0x36   :  { %383 = vmatprep.subr.mxu0 %v530_v0  ;;  %394 = vmatprep.subr.mxu1 %v530_v0  ;;  %v167_v12 = vld [vmem:[#allocation6 + $0x8] sm:$0xff]  ;;  %v166_v13 = vld [vmem:[#allocation6] sm:$0xff]  ;;  %v263_v14 = vld [vmem:[#allocation7 + $0x38] sm:$0xff] }
  0x37   :  { %384 = vmatpush3.msra.mxu0 %v82_v2  ;;  %395 = vmatpush3.msra.mxu1 %v172_v5  ;;  %v262_v15 = vld [vmem:[#allocation7 + $0x30] sm:$0xff]  ;;  %v261_v16 = vld [vmem:[#allocation7 + $0x28] sm:$0xff]  ;;  %v260_v17 = vld [vmem:[#allocation7 + $0x20] sm:$0xff] }
  0x38   :  { %385 = vmatprep.subr.mxu0 %v530_v0  ;;  %396 = vmatprep.subr.mxu1 %v530_v0  ;;  %v259_v18 = vld [vmem:[#allocation7 + $0x18] sm:$0xff]  ;;  %v258_v24 = vld [vmem:[#allocation7 + $0x10] sm:$0xff]  ;;  %v257_v25 = vld [vmem:[#allocation7 + $0x8] sm:$0xff] }
  0x39   :  { %386 = vmatpush3.msra.mxu0 %v81_v4  ;;  %397 = vmatpush3.msra.mxu1 %v171_v6  ;;  %v352_v19 = vld [vmem:[%s635_s2] ss:$0 sm:$0xff]  ;;  %v256_v26 = vld [vmem:[#allocation7] sm:$0xff] }
  0x3a   :  { %387 = vmatprep.subr.mxu0 %v530_v0  ;;  %398 = vmatprep.subr.mxu1 %v530_v0  ;;  %v354_v27 = vld [vmem:[%s637_s4] ss:$0 sm:$0xff] }
  0x3b   :  { %388 = vmatpush3.msra.mxu0 %v80_v7  ;;  %399 = vmatpush3.msra.mxu1 %v170_v9  ;;  %v356_v32 = vld [vmem:[%s639_s6] ss:$0 sm:$0xff] }
  0x3c   :  { %390 = vmatmul.mubr.msk.f32.vlgmr.msra.gmra.mxu0 %vm91_vm1, %v79_v8  ;;  %400 = vmatprep.subr.mxu1 %v530_v0 }
  0x3d   :  { %411 = vmatprep.subr.mxu0 %v530_v0  ;;  %401 = vmatpush3.msra.mxu1 %v169_v10 }
  0x3e   :  { %427 = vmatprep.mubr.msk.f32.mxu0 %vm531_vm0, %v530_v0  ;;  %402 = vmatprep.subr.mxu1 %v530_v0 }
  0x3f   :  { %403 = vmatpush3.msra.mxu1 %v168_v11  ;;  %412 = vmatpush3.msra.mxu0 %v263_v14 }
  0x40   :  { %404 = vmatprep.subr.mxu1 %v530_v0  ;;  %413 = vmatprep.subr.mxu0 %v530_v0 }
  0x41   :  { %405 = vmatpush3.msra.mxu1 %v167_v12  ;;  %414 = vmatpush3.msra.mxu0 %v262_v15 }
  0x42   :  { %406 = vmatprep.subr.mxu1 %v530_v0  ;;  %415 = vmatprep.subr.mxu0 %v530_v0 }
  0x43   :  { %407 = vmatpush3.msra.mxu1 %v166_v13  ;;  %416 = vmatpush3.msra.mxu0 %v261_v16 }
  0x44   :  { %417 = vmatprep.subr.mxu0 %v530_v0 }
  0x45   :  { %418 = vmatpush3.msra.mxu0 %v260_v17 }
  0x46   :  { %419 = vmatprep.subr.mxu0 %v530_v0 }
  0x47   :  { %420 = vmatpush3.msra.mxu0 %v259_v18 }
  0x48   :  { %421 = vmatprep.subr.mxu0 %v530_v0 }
  0x49   :  { %422 = vmatpush3.msra.mxu0 %v258_v24 }
  0x4a   :  { %423 = vmatprep.subr.mxu0 %v530_v0 }
  0x4b   :  { %424 = vmatpush3.msra.mxu0 %v257_v25 }
  0x4c   :  { %425 = vmatprep.subr.mxu0 %v530_v0 }
  0x4d   :  { %426 = vmatpush3.msra.mxu0 %v256_v26 }
  0xfc   :  { %v161_v20 = vpop.f32.mrf.mxu0 }
  0xfd   :  { %v162_v21 = vadd.f32 %v352_v19, %v161_v20 }
  0xfe   :  { %v391_v22 = vpop.f32.mrf.mxu0 }
  0xff   :  { %v165_v23 = vmax.f32 %v162_v21, 0.0 }
 0x101   :  { %409 = vmatmul.mubr.msk.f32.vlgmr.msra.gmra.mxu1 %vm181_vm2, %v165_v23 }
 0x1c1   :  { %v251_v28 = vpop.f32.mrf.mxu1 }
 0x1c2   :  { %v252_v29 = vadd.f32 %v354_v27, %v251_v28 }
 0x1c3   :  { %v410_v30 = vpop.f32.mrf.mxu1 }
 0x1c4   :  { %v255_v31 = vmax.f32 %v252_v29, 0.0 }
 0x1c6   :  { %428 = vmatmul.mubr.msk.f32.vlgmr.msra.gmra.mxu0 %vm181_vm2, %v255_v31 }
 0x286   :  { %v340_v33 = vpop.f32.mrf.mxu0 }
 0x287   :  { %v341_v34 = vadd.f32 %v356_v32, %v340_v33 }
 0x288   :  { %v429_v35 = vpop.f32.mrf.mxu0 }
 0x289   :  { %344 = vst [vmem:[%s640_s7] sm:$0xff] %v341_v34 }
 0x28a   :  { %349 = vsyncpa [#allocation3], 1 }
 0x28b   :  { %350 = vsyncpa [#allocation5], 1 }
 0x28c   :  { %351 = vsyncpa [#allocation8], 1 }

</bundles_post_ra>
